<compile_context>
chip_gen: v6e
topology: v6e:2x2x1
jax: 0.10.0
libtpu: 0.0.40
codegen_flags: <defaults>
</compile_context>

<pallas_src>
import functools

import jax
import jax.numpy as jnp
from jax.experimental import pallas as pl
from jax.experimental.pallas import tpu as pltpu


def _round_up(n, m):
    return ((n + m - 1) // m) * m


def _device_kind():
    try:
        return jax.devices()[0].device_kind.lower()
    except Exception:
        return ""


def _vmem_capacity_bytes():
    try:
        return int(pltpu.get_tpu_info().vmem_capacity_bytes)
    except Exception:
        return 64 << 20   # conservative fallback (v7x per-TC size)


def _const_spec(shape, index_map):
    """Grid-invariant block: single-buffer it if this JAX supports Buffered."""
    if hasattr(pl, "Buffered"):
        try:
            return pl.BlockSpec(shape, index_map, pipeline_mode=pl.Buffered(1))
        except TypeError:
            pass
    return pl.BlockSpec(shape, index_map)


def _pick_batch_tile(B, S, target_rows=512, num_cores=1):
    """Batch elements per grid step.  Fill >= target_rows MXU rows; only on
    multi-TensorCore parts (v7x) keep >= num_cores grid steps; Bt divides B;
    flattened row-block (Bt*S) stays sublane-friendly unless it covers B."""
    divs = [d for d in range(1, B + 1) if B % d == 0]
    want = max(1, -(-target_rows // S))            # ceil(target_rows / S)
    if num_cores >= 2 and B >= num_cores:
        want = min(want, B // num_cores)
    bt = max(d for d in divs if d <= max(1, want))
    while bt < B and (bt * S) % 8 != 0:
        bt = min(d for d in divs if d > bt)
    return bt


def dense_head_kernel(x_ref, w1_ref, b1_ref, w2_ref, b2_ref,
                      logits_ref, y_ref, *, seq_len, num_labels, tanh_in_bf16):
    # x_ref:      (Bt*S, Hp)   f32 (unpadded H case) or bf16 (padded case)
    # w1_ref:     (Hp, Hp)     bf16;  b1_ref: (1, Hp) f32
    # w2_ref:     (Hp, Lp)     bf16;  b2_ref: (1, Lp) f32
    # logits_ref: (Bt, S, L)   f32
    # y_ref:      (Bt, S, 1)   i32
    rows, Hp = x_ref.shape
    Bt = rows // seq_len
    Lp = w2_ref.shape[-1]
    L = num_labels

    # VPU cast (no-op when the wrapper already delivered bf16).
    x = x_ref[...].astype(jnp.bfloat16)

    # dense + tanh (dropout is identity in eval mode); f32 MXU accumulation.
    h32 = jnp.dot(x, w1_ref[...], preferred_element_type=jnp.float32) + b1_ref[...]
    if tanh_in_bf16:
        h = jnp.tanh(h32.astype(jnp.bfloat16))           # bf16 EUP (v6e/v7x)
    else:
        h = jnp.tanh(h32).astype(jnp.bfloat16)           # f32 EUP (v5e)

    # classifier head; bf16 operands, f32 accumulation.
    z = jnp.dot(h, w2_ref[...], preferred_element_type=jnp.float32) + b2_ref[...]

    # Only the small z is reshaped; drop the zero-padded label columns before
    # the softmax/argmax so they can never win the argmax.
    z3 = z.reshape(Bt, seq_len, Lp)[:, :, :L]             # (Bt, S, L)

    # softmax over dim=1 of (B, S, L) == the sequence axis, independently per
    # batch element and label column (matches nn.Softmax(dim=1)).
    m = jnp.max(z3, axis=1, keepdims=True)                # (Bt, 1, L)
    e = jnp.exp(z3 - m)                                   # (Bt, S, L)
    denom = jnp.sum(e, axis=1, keepdims=True)             # (Bt, 1, L)
    probs = e * pl.reciprocal(denom, approx=True)         # (Bt, S, L)
    logits_ref[...] = probs.astype(logits_ref.dtype)

    # Fused argmax over labels (last axis), first-max tie-break like torch/jnp.
    pmax = jnp.max(probs, axis=-1, keepdims=True)
    lab = jax.lax.broadcasted_iota(jnp.int32, probs.shape, dimension=2)
    y = jnp.min(jnp.where(probs == pmax, lab, L), axis=-1, keepdims=True)
    y_ref[...] = y.astype(jnp.int32)


def prepare_params(w_dense, b_dense, w_cls, b_cls):
    """Pad/cast the (in, out)-layout weights once at model load (not per call)."""
    H = w_dense.shape[0]
    L = w_cls.shape[1]
    Hp = _round_up(H, 128)
    Lp = _round_up(L, 128)
    # Zero padding keeps the math exact: padded hidden columns of h are
    # tanh(0)=0 and hit zero rows of W_cls; padded label columns are sliced
    # off inside the kernel before softmax/argmax.
    w1 = jnp.zeros((Hp, Hp), jnp.bfloat16).at[:H, :H].set(w_dense.astype(jnp.bfloat16))
    b1 = jnp.zeros((1, Hp), jnp.float32).at[0, :H].set(b_dense.astype(jnp.float32))
    w2 = jnp.zeros((Hp, Lp), jnp.bfloat16).at[:H, :L].set(w_cls.astype(jnp.bfloat16))
    b2 = jnp.zeros((1, Lp), jnp.float32).at[0, :L].set(b_cls.astype(jnp.float32))
    return dict(w1=w1, b1=b1, w2=w2, b2=b2, H=H, L=L, Hp=Hp, Lp=Lp)


def dense_head_forward(x, params):
    """x: (B, S, H) f32; params from prepare_params.
    Returns (logits (B, S, L) f32, y_hat (B, S) i32)."""
    B, S, H = x.shape
    Hp, Lp, L = params["Hp"], params["Lp"], params["L"]
    assert H == params["H"]

    kind = _device_kind()
    num_tc = 2 if "v7" in kind else 1           # v7x: 2 TensorCores per chip
    tanh_in_bf16 = "v5" not in kind             # no bf16 EUP/VPU on v5e
    vmem_cap = _vmem_capacity_bytes()

    # Activation path: skip the wrapper pad/cast copy when H is lane-aligned;
    # the f32 -> bf16 cast then happens on the VPU inside the kernel.
    if H == Hp:
        x_in = x.reshape(B * S, Hp)                        # free reshape, f32
        x_itemsize = jnp.dtype(x.dtype).itemsize
    else:
        xp = jnp.zeros((B, S, Hp), jnp.bfloat16).at[:, :, :H].set(x.astype(jnp.bfloat16))
        x_in = xp.reshape(B * S, Hp)
        x_itemsize = 2

    divs = [d for d in range(1, B + 1) if B % d == 0]
    Bt = _pick_batch_tile(B, S, target_rows=512, num_cores=num_tc)

    weight_bufs = 1 if hasattr(pl, "Buffered") else 2

    def vmem_needed(bt):
        rows = bt * S
        return (
            2 * rows * Hp * x_itemsize                      # x block, double-buffered
            + 2 * rows * L * 4                              # logits out, double-buffered
            + 2 * rows * 1 * 4                              # y_hat out, double-buffered
            + weight_bufs * ((Hp * Hp + Hp * Lp) * 2 + (Hp + Lp) * 4)  # weights/biases
            + rows * Hp * 4 + rows * Hp * 2                 # h accumulator f32 + bf16 h
            + 3 * rows * Lp * 4                             # z / exp / probs intermediates
        )

    # Shrink the batch tile if the working set would not fit this generation.
    while Bt > 1 and vmem_needed(Bt) > int(0.6 * vmem_cap):
        Bt = max(d for d in divs if d < Bt)
    rows = Bt * S
    grid = (B // Bt,)

    vmem_limit = min(max(int(1.5 * vmem_needed(Bt)) + (2 << 20), 32 << 20),
                     int(0.75 * vmem_cap))

    cost = pl.CostEstimate(
        flops=2 * B * S * Hp * (Hp + Lp),
        transcendentals=B * S * (Hp + L),
        bytes_accessed=(B * S * Hp * x_itemsize
                        + (Hp * Hp + Hp * Lp) * 2 + (Hp + Lp) * 4
                        + B * S * L * 4 + B * S * 4),
    )

    kernel = functools.partial(dense_head_kernel, seq_len=S, num_labels=L,
                               tanh_in_bf16=tanh_in_bf16)

    logits, y_pad = pl.pallas_call(
        kernel,
        out_shape=(jax.ShapeDtypeStruct((B, S, L), jnp.float32),
                   jax.ShapeDtypeStruct((B, S, 1), jnp.int32)),
        grid_spec=pltpu.PrefetchScalarGridSpec(
            num_scalar_prefetch=0,
            grid=grid,
            in_specs=[
                pl.BlockSpec((rows, Hp), lambda b: (b, 0)),      # x (flattened rows)
                _const_spec((Hp, Hp), lambda b: (0, 0)),         # W_dense (single-buffered)
                _const_spec((1, Hp), lambda b: (0, 0)),          # b_dense
                _const_spec((Hp, Lp), lambda b: (0, 0)),         # W_cls
                _const_spec((1, Lp), lambda b: (0, 0)),          # b_cls
            ],
            out_specs=[
                pl.BlockSpec((Bt, S, L), lambda b: (b, 0, 0)),   # logits (unpadded L)
                pl.BlockSpec((Bt, S, 1), lambda b: (b, 0, 0)),   # fused argmax
            ],
        ),
        compiler_params=pltpu.CompilerParams(
            dimension_semantics=("parallel",),   # batch-tile axis shards across TCs
            vmem_limit_bytes=vmem_limit,
        ),
        cost_estimate=cost,
    )(x_in, params["w1"], params["b1"], params["w2"], params["b2"])

    return logits, y_pad[:, :, 0]


def reference_forward(x, w_dense, b_dense, w_cls, b_cls, *,
                      match_kernel=False, tanh_in_bf16=True):
    """Pure-JAX reference.  match_kernel=True applies the same bf16 operand
    casts (and bf16 tanh input when applicable) for a tighter comparison."""
    if match_kernel:
        xd = x.astype(jnp.bfloat16)
        w1 = w_dense.astype(jnp.bfloat16)
        w2 = w_cls.astype(jnp.bfloat16)
        a = jnp.dot(xd, w1, preferred_element_type=jnp.float32) + b_dense
        if tanh_in_bf16:
            h = jnp.tanh(a.astype(jnp.bfloat16).astype(jnp.float32)).astype(jnp.bfloat16)
        else:
            h = jnp.tanh(a).astype(jnp.bfloat16)
        z = jnp.dot(h, w2, preferred_element_type=jnp.float32) + b_cls
    else:
        h = jnp.tanh(jnp.dot(x, w_dense) + b_dense)
        z = jnp.dot(h, w_cls) + b_cls
    logits = jax.nn.softmax(z, axis=1)            # dim=1 == seq axis, as in the module
    return logits, jnp.argmax(logits, axis=-1).astype(jnp.int32)


if __name__ == "__main__":
    # small shapes consistent with the module: batch=2, seq=8, hidden=32, labels=4
    B, S, H, L = 2, 8, 32, 4
    key = jax.random.PRNGKey(0)
    kx, k1, k2, k3, k4 = jax.random.split(key, 5)

    x = jax.random.normal(kx, (B, S, H), dtype=jnp.float32)
    # deterministic synthetic parameters (stored (in, out) so kernel does x @ W)
    w_dense = jax.random.normal(k1, (H, H), dtype=jnp.float32) * 0.05
    b_dense = jax.random.normal(k2, (H,), dtype=jnp.float32) * 0.05
    w_cls = jax.random.normal(k3, (H, L), dtype=jnp.float32) * 0.05
    b_cls = jax.random.normal(k4, (L,), dtype=jnp.float32) * 0.05

    # TODO(synk): nn.Dropout is identity in eval mode; training-mode dropout masks not implemented.
    params = prepare_params(w_dense, b_dense, w_cls, b_cls)   # once, at model load
    logits, y_hat = dense_head_forward(x, params)
    jax.block_until_ready(logits)
    jax.block_until_ready(y_hat)

    assert logits.shape == (B, S, L) and y_hat.shape == (B, S)

    # 1) semantics check vs the PyTorch-faithful f32 math (loose: bf16 MXU operands)
    ref_logits_f32, _ = reference_forward(x, w_dense, b_dense, w_cls, b_cls)
    assert jnp.allclose(logits, ref_logits_f32, atol=3e-2, rtol=3e-2)

    # 2) tighter numerical check vs a reference using the same bf16 operand casts
    tanh_bf16 = "v5" not in _device_kind()
    ref_logits, ref_y = reference_forward(x, w_dense, b_dense, w_cls, b_cls,
                                          match_kernel=True, tanh_in_bf16=tanh_bf16)
    assert jnp.allclose(logits, ref_logits, atol=1e-2, rtol=1e-2)

    # 3) argmax check, ignoring positions where the reference top-2 labels are near-tied
    top2 = jax.lax.top_k(ref_logits, 2)[0]
    decisive = (top2[..., 0] - top2[..., 1]) > 1e-3
    assert bool(jnp.all(jnp.where(decisive, y_hat == ref_y, True)))

    print("KERNEL_OK")
</pallas_src>

<mosaic_0001>
module attributes {stable_mosaic.version = 11 : i64} {
  func.func @dense_head_kernel(%arg0: i32, %arg1: memref<16x128xbf16, #tpu.memory_space<vmem>>, %arg2: memref<128x128xbf16, #tpu.memory_space<vmem>>, %arg3: memref<1x128xf32, #tpu.memory_space<vmem>>, %arg4: memref<128x128xbf16, #tpu.memory_space<vmem>>, %arg5: memref<1x128xf32, #tpu.memory_space<vmem>>, %arg6: memref<2x8x4xf32, #tpu.memory_space<vmem>>, %arg7: memref<2x8x1xi32, #tpu.memory_space<vmem>>) attributes {dimension_semantics = [#tpu.dimension_semantics<parallel>], iteration_bounds = array<i64: 1>, scalar_prefetch = 0 : i64, scratch_operands = 0 : i64, tpu.core_type = #tpu.core_type<tc>, window_params = [{transform_indices = @transform_0, window_bounds = array<i64: 16, 128>}, {pipeline_mode = #tpu.pipeline_mode<synchronous>, transform_indices = @transform_1, window_bounds = array<i64: 128, 128>}, {pipeline_mode = #tpu.pipeline_mode<synchronous>, transform_indices = @transform_2, window_bounds = array<i64: 1, 128>}, {pipeline_mode = #tpu.pipeline_mode<synchronous>, transform_indices = @transform_3, window_bounds = array<i64: 128, 128>}, {pipeline_mode = #tpu.pipeline_mode<synchronous>, transform_indices = @transform_4, window_bounds = array<i64: 1, 128>}, {transform_indices = @transform_5, window_bounds = array<i64: 2, 8, 4>}, {transform_indices = @transform_6, window_bounds = array<i64: 2, 8, 1>}]} {
    %c0 = arith.constant 0 : index
    %c0_0 = arith.constant 0 : index
    %0 = vector.load %arg1[%c0, %c0_0] : memref<16x128xbf16, #tpu.memory_space<vmem>>, vector<16x128xbf16>
    %c0_1 = arith.constant 0 : index
    %c0_2 = arith.constant 0 : index
    %1 = vector.load %arg2[%c0_1, %c0_2] : memref<128x128xbf16, #tpu.memory_space<vmem>>, vector<128x128xbf16>
    %cst = arith.constant dense<0.000000e+00> : vector<16x128xf32>
    %2 = tpu.matmul %0, %1, %cst {dimension_numbers = #tpu.dot_dimension_numbers<[1], [0], [0], [1], [0, 0, 1, 1], [], []>} : vector<16x128xbf16>, vector<128x128xbf16>, vector<16x128xf32> -> vector<16x128xf32>
    %c0_3 = arith.constant 0 : index
    %c0_4 = arith.constant 0 : index
    %3 = vector.load %arg3[%c0_3, %c0_4] : memref<1x128xf32, #tpu.memory_space<vmem>>, vector<1x128xf32>
    %4 = vector.broadcast %3 : vector<1x128xf32> to vector<16x128xf32>
    %5 = arith.addf %2, %4 : vector<16x128xf32>
    %6 = arith.truncf %5 : vector<16x128xf32> to vector<16x128xbf16>
    %7 = math.tanh %6 : vector<16x128xbf16>
    %c0_5 = arith.constant 0 : index
    %c0_6 = arith.constant 0 : index
    %8 = vector.load %arg4[%c0_5, %c0_6] : memref<128x128xbf16, #tpu.memory_space<vmem>>, vector<128x128xbf16>
    %cst_7 = arith.constant dense<0.000000e+00> : vector<16x128xf32>
    %9 = tpu.matmul %7, %8, %cst_7 {dimension_numbers = #tpu.dot_dimension_numbers<[1], [0], [0], [1], [0, 0, 1, 1], [], []>} : vector<16x128xbf16>, vector<128x128xbf16>, vector<16x128xf32> -> vector<16x128xf32>
    %c0_8 = arith.constant 0 : index
    %c0_9 = arith.constant 0 : index
    %10 = vector.load %arg5[%c0_8, %c0_9] : memref<1x128xf32, #tpu.memory_space<vmem>>, vector<1x128xf32>
    %11 = vector.broadcast %10 : vector<1x128xf32> to vector<16x128xf32>
    %12 = arith.addf %9, %11 : vector<16x128xf32>
    %13 = vector.shape_cast %12 : vector<16x128xf32> to vector<2x8x128xf32>
    %14 = vector.extract_strided_slice %13 {offsets = [0, 0, 0], sizes = [2, 8, 4], strides = [1, 1, 1]} : vector<2x8x128xf32> to vector<2x8x4xf32>
    %cst_10 = arith.constant dense<0xFF800000> : vector<2x4xf32>
    %15 = vector.multi_reduction <maximumf>, %14, %cst_10 [1] : vector<2x8x4xf32> to vector<2x4xf32>
    %16 = vector.shape_cast %15 : vector<2x4xf32> to vector<2x1x4xf32>
    %17 = vector.broadcast %16 : vector<2x1x4xf32> to vector<2x8x4xf32>
    %18 = arith.subf %14, %17 : vector<2x8x4xf32>
    %19 = math.exp %18 : vector<2x8x4xf32>
    %cst_11 = arith.constant dense<0.000000e+00> : vector<2x4xf32>
    %20 = vector.multi_reduction <add>, %19, %cst_11 [1] : vector<2x8x4xf32> to vector<2x4xf32>
    %21 = vector.shape_cast %20 : vector<2x4xf32> to vector<2x1x4xf32>
    %22 = tpu.reciprocal %21 {approx = true} : vector<2x1x4xf32> -> vector<2x1x4xf32>
    %23 = vector.broadcast %22 : vector<2x1x4xf32> to vector<2x8x4xf32>
    %24 = arith.mulf %19, %23 : vector<2x8x4xf32>
    %c0_12 = arith.constant 0 : index
    %c0_13 = arith.constant 0 : index
    %c0_14 = arith.constant 0 : index
    %25 = vector.load %arg6[%c0_12, %c0_13, %c0_14] : memref<2x8x4xf32, #tpu.memory_space<vmem>>, vector<2x8x4xf32>
    tpu.vector_store %arg6[%c0_12, %c0_13, %c0_14], %24 {strides = array<i32>} : memref<2x8x4xf32, #tpu.memory_space<vmem>>, vector<2x8x4xf32>,
    %cst_15 = arith.constant dense<0xFF800000> : vector<2x8xf32>
    %26 = vector.multi_reduction <maximumf>, %24, %cst_15 [2] : vector<2x8x4xf32> to vector<2x8xf32>
    %27 = vector.shape_cast %26 : vector<2x8xf32> to vector<2x8x1xf32>
    %28 = tpu.iota {dimensions = array<i32: 2>} : vector<2x8x4xi32>
    %29 = vector.broadcast %27 : vector<2x8x1xf32> to vector<2x8x4xf32>
    %30 = arith.cmpf oeq, %24, %29 : vector<2x8x4xf32>
    %c4_i32 = arith.constant 4 : i32
    %31 = vector.broadcast %c4_i32 : i32 to vector<2x8x4xi32>
    %32 = arith.select %30, %28, %31 : vector<2x8x4xi1>, vector<2x8x4xi32>
    %cst_16 = arith.constant dense<2147483647> : vector<2x8xi32>
    %33 = vector.multi_reduction <minsi>, %32, %cst_16 [2] : vector<2x8x4xi32> to vector<2x8xi32>
    %34 = vector.shape_cast %33 : vector<2x8xi32> to vector<2x8x1xi32>
    %c0_17 = arith.constant 0 : index
    %c0_18 = arith.constant 0 : index
    %c0_19 = arith.constant 0 : index
    %35 = vector.load %arg7[%c0_17, %c0_18, %c0_19] : memref<2x8x1xi32, #tpu.memory_space<vmem>>, vector<2x8x1xi32>
    tpu.vector_store %arg7[%c0_17, %c0_18, %c0_19], %34 {strides = array<i32>} : memref<2x8x1xi32, #tpu.memory_space<vmem>>, vector<2x8x1xi32>,
    return
  }
  func.func @transform_0(%arg0: i32) -> (i32, i32) {
    %c0_i32 = arith.constant 0 : i32
    %c0_i32_0 = arith.constant 0 : i32
    return %arg0, %c0_i32 : i32, i32
  }
  func.func @transform_1(%arg0: i32) -> (i32, i32) {
    %c0_i32 = arith.constant 0 : i32
    %c0_i32_0 = arith.constant 0 : i32
    %c0_i32_1 = arith.constant 0 : i32
    return %c0_i32, %c0_i32_0 : i32, i32
  }
  func.func @transform_2(%arg0: i32) -> (i32, i32) {
    %c0_i32 = arith.constant 0 : i32
    %c0_i32_0 = arith.constant 0 : i32
    %c0_i32_1 = arith.constant 0 : i32
    return %c0_i32, %c0_i32_0 : i32, i32
  }
  func.func @transform_3(%arg0: i32) -> (i32, i32) {
    %c0_i32 = arith.constant 0 : i32
    %c0_i32_0 = arith.constant 0 : i32
    %c0_i32_1 = arith.constant 0 : i32
    return %c0_i32, %c0_i32_0 : i32, i32
  }
  func.func @transform_4(%arg0: i32) -> (i32, i32) {
    %c0_i32 = arith.constant 0 : i32
    %c0_i32_0 = arith.constant 0 : i32
    %c0_i32_1 = arith.constant 0 : i32
    return %c0_i32, %c0_i32_0 : i32, i32
  }
  func.func @transform_5(%arg0: i32) -> (i32, i32, i32) {
    %c0_i32 = arith.constant 0 : i32
    %c0_i32_0 = arith.constant 0 : i32
    %c0_i32_1 = arith.constant 0 : i32
    return %arg0, %c0_i32, %c0_i32_0 : i32, i32, i32
  }
  func.func @transform_6(%arg0: i32) -> (i32, i32, i32) {
    %c0_i32 = arith.constant 0 : i32
    %c0_i32_0 = arith.constant 0 : i32
    %c0_i32_1 = arith.constant 0 : i32
    return %arg0, %c0_i32, %c0_i32_0 : i32, i32, i32
  }
}

</mosaic_0001>

<bundles_post_ra>
// kernel: tpu_custom_call.1
= control target key start
LH: loop header
LB: loop body
LE: loop exit
PB: predicated region body
PF: predicated region fallthrough
CT: control target
= control target key end

     0   :  { %12 = vsyncpa [#allocation3], 0  ;;  %s648_s0 = inlined_call_operand.hbm [shape: bf16[16,128], index: 0, kind: input, shape index: {}]   ;;  %s649_s1 = inlined_call_operand.hbm [shape: bf16[128,128], index: 1, kind: input, shape index: {}]   ;;  %s650_s2 = inlined_call_operand.vmem [shape: f32[1,128], index: 2, kind: input, shape index: {}]   ;;  %s651_s3 = inlined_call_operand.hbm [shape: bf16[128,128], index: 3, kind: input, shape index: {}]   ;;  %s652_s4 = inlined_call_operand.vmem [shape: f32[1,128], index: 4, kind: input, shape index: {}]   ;;  %s653_s5 = inlined_call_operand.vmem [shape: f32[2,8,4], index: 5, kind: output, shape index: {0}]   ;;  %s654_s6 = inlined_call_operand.vmem [shape: s32[2,8,1], index: 6, kind: output, shape index: {1}]  }
   0x1   :  { %13 = vsyncpa [#allocation5], 0  ;;  %s569_s21 = smov [#allocation4]   ;;  %s570_s23 = smov [#allocation2]  }
   0x2   :  { %s31_s22 = sshll.u32 %s569_s21, 4  ;;  %s19_s24 = sshll.u32 %s570_s23, 4  ;;  %s32_s22 = int_to_ptr.vmem [resolvable:$true] %s31_s22  ;;  %s20_s24 = int_to_ptr.vmem [resolvable:$true] %s19_s24 }
   0x3   :  { %s513_s25 = scalar_lea.vmem %s32_s22, 1024  ;;  %p518_p1 = scmp.lt.s32.totalorder %s32_s22, %s32_s22 }
   0x4   :  { %p514_p0 = scmp.ne.s32.totalorder %s32_s22, %s513_s25  ;;  %p519_p2 = scmp.lt.s32.totalorder %s513_s25, %s513_s25 }
   0x6   :  { %p520_p3 = por %p519_p2, %p518_p1 }
   0x8   :  { %p521_p4 = pnand %p520_p3, %p514_p0 }
   0xa   :  { %524 = shalt.err (!%p521_p4)
}
   0xb   :  { %s571_s26 = smov 64   ;;  %s572_s27 = smov 4  }
   0xc   :  { %37 = dma.hbm_to_vmem [thread:$0]  %s649_s1, 1024, %s32_s22, [#allocation5], %s571_s26, %s571_s26, %s572_s27  }
   0xd   :  { %s533_s30 = scalar_lea.vmem %s20_s24, 128  ;;  %p538_p6 = scmp.lt.s32.totalorder %s20_s24, %s20_s24 }
   0xe   :  { %p534_p5 = scmp.ne.s32.totalorder %s20_s24, %s533_s30  ;;  %p539_p7 = scmp.lt.s32.totalorder %s533_s30, %s533_s30 }
  0x10   :  { %p540_p8 = por %p539_p7, %p538_p6 }
  0x12   :  { %p541_p9 = pnand %p540_p8, %p534_p5 }
  0x14   :  { %544 = shalt.err (!%p541_p9)
}
  0x15   :  { %25 = dma.hbm_to_vmem [thread:$0]  %s648_s0, 128, %s20_s24, [#allocation3], %s571_s26, %s571_s26, %s572_s27  }
  0x16   :  { %s573_s9 = smov [#allocation6]  }
  0x17   :  { %s45_s10 = sshll.u32 %s573_s9, 4  ;;  %s46_s10 = int_to_ptr.vmem [resolvable:$true] %s45_s10 }
  0x18   :  { %s553_s11 = scalar_lea.vmem %s46_s10, 1024  ;;  %p558_p11 = scmp.lt.s32.totalorder %s46_s10, %s46_s10 }
  0x19   :  { %p554_p10 = scmp.ne.s32.totalorder %s46_s10, %s553_s11  ;;  %p559_p12 = scmp.lt.s32.totalorder %s553_s11, %s553_s11 }
  0x1b   :  { %p560_p13 = por %p559_p12, %p558_p11 }
  0x1d   :  { %p561_p0 = pnand %p560_p13, %p554_p10 }
  0x1f   :  { %564 = shalt.err (!%p561_p0)
}
  0x20   :  { %51 = dma.hbm_to_vmem [thread:$0]  %s651_s3, 1024, %s46_s10, [#allocation5], %s571_s26, %s571_s26, %s572_s27  }
  0x21   :  { %565 = dma.done.wait [#allocation3], 128  }
  0x22   :  { %566 = vsyncadd [#allocation3], 4294967168 }
  0x23   :  { %567 = dma.done.wait [#allocation5], 2048  }
  0x24   :  { %568 = vsyncadd [#allocation5], 4294965248  ;;  %v574_v0 = vmov 0.0   ;;  %vm575_vm0 = vmmov 0   ;;  %v478_v1 = vld [vmem:[#allocation4 + $0x38] sm:$0xff]   ;;  %v479_v2 = vld [vmem:[#allocation4 + $0x30] sm:$0xff]  }
  0x25   :  { %431 = vmatprep.subr.bf16.mxu0 %v574_v0  ;;  %447 = vmatprep.mubr.msk.bf16.mxu0 %vm575_vm0, %v574_v0  ;;  %v480_v3 = vld [vmem:[#allocation4 + $0x28] sm:$0xff]   ;;  %v487_v4 = vld [vmem:[#allocation6 + $0x38] sm:$0xff]   ;;  %v481_v5 = vld [vmem:[#allocation4 + $0x20] sm:$0xff]   ;;  %vm298_vm1 = vcmask 31744   ;;  %vm381_vm6 = vcmask 7168  }
  0x26   :  { %451 = vmatprep.subr.bf16.mxu1 %v574_v0  ;;  %467 = vmatprep.mubr.msk.bf16.mxu1 %vm575_vm0, %v574_v0  ;;  %v488_v6 = vld [vmem:[#allocation6 + $0x30] sm:$0xff]   ;;  %v482_v7 = vld [vmem:[#allocation4 + $0x18] sm:$0xff]   ;;  %v484_v9 = vld [vmem:[#allocation4 + $0x8] sm:$0xff]  }
  0x27   :  { %432 = vmatpush3.bf16.msra.mxu0 %v478_v1  ;;  %452 = vmatpush3.bf16.msra.mxu1 %v487_v4  ;;  %v483_v8 = vld [vmem:[#allocation4 + $0x10] sm:$0xff]   ;;  %v485_v10 = vld [vmem:[#allocation4] sm:$0xff]   ;;  %v486_v11 = vld [vmem:[#allocation2] sm:$0xff]  }
  0x28   :  { %433 = vmatprep.subr.bf16.mxu0 %v574_v0  ;;  %453 = vmatprep.subr.bf16.mxu1 %v574_v0  ;;  %v489_v12 = vld [vmem:[#allocation6 + $0x28] sm:$0xff]   ;;  %v490_v13 = vld [vmem:[#allocation6 + $0x20] sm:$0xff]   ;;  %v491_v14 = vld [vmem:[#allocation6 + $0x18] sm:$0xff]  }
  0x29   :  { %v492_v15 = vld [vmem:[#allocation6 + $0x10] sm:$0xff]   ;;  %v493_v16 = vld [vmem:[#allocation6 + $0x8] sm:$0xff]   ;;  %v494_v17 = vld [vmem:[#allocation6] sm:$0xff]  }
  0x2a   :  { %v394_v19 = vld [vmem:[%s650_s2] ss:$0 sm:$0xff] }
  0x2b   :  { %434 = vmatpush3.bf16.msra.mxu0 %v479_v2  ;;  %454 = vmatpush3.bf16.msra.mxu1 %v488_v6  ;;  %v404_v27 = vld [vmem:[%s652_s4] ss:$0 sm:$0xff] }
  0x2c   :  { %435 = vmatprep.subr.bf16.mxu0 %v574_v0  ;;  %455 = vmatprep.subr.bf16.mxu1 %v574_v0 }
  0x2f   :  { %436 = vmatpush3.bf16.msra.mxu0 %v480_v3  ;;  %456 = vmatpush3.bf16.msra.mxu1 %v489_v12 }
  0x30   :  { %437 = vmatprep.subr.bf16.mxu0 %v574_v0  ;;  %457 = vmatprep.subr.bf16.mxu1 %v574_v0 }
  0x33   :  { %438 = vmatpush3.bf16.msra.mxu0 %v481_v5  ;;  %458 = vmatpush3.bf16.msra.mxu1 %v490_v13 }
  0x34   :  { %439 = vmatprep.subr.bf16.mxu0 %v574_v0  ;;  %459 = vmatprep.subr.bf16.mxu1 %v574_v0 }
  0x37   :  { %440 = vmatpush3.bf16.msra.mxu0 %v482_v7  ;;  %460 = vmatpush3.bf16.msra.mxu1 %v491_v14 }
  0x38   :  { %441 = vmatprep.subr.bf16.mxu0 %v574_v0  ;;  %461 = vmatprep.subr.bf16.mxu1 %v574_v0 }
  0x3b   :  { %442 = vmatpush3.bf16.msra.mxu0 %v483_v8  ;;  %462 = vmatpush3.bf16.msra.mxu1 %v492_v15 }
  0x3c   :  { %443 = vmatprep.subr.bf16.mxu0 %v574_v0  ;;  %463 = vmatprep.subr.bf16.mxu1 %v574_v0 }
  0x3f   :  { %444 = vmatpush3.bf16.msra.mxu0 %v484_v9  ;;  %464 = vmatpush3.bf16.msra.mxu1 %v493_v16 }
  0x40   :  { %445 = vmatprep.subr.bf16.mxu0 %v574_v0  ;;  %465 = vmatprep.subr.bf16.mxu1 %v574_v0 }
  0x43   :  { %446 = vmatpush3.bf16.msra.mxu0 %v485_v10  ;;  %466 = vmatpush3.bf16.msra.mxu1 %v494_v17  ;;  %v345_v10 = vlaneseq }
  0x46   :  { %448 = vmatmul.mubr.bf16.vlgmr.msra.gmra.mxu0 %v486_v11  ;;  %v346_v11 = vand.u32 127, %v345_v10 }
 0x106   :  { %v177_v18 = vpop.f32.mrf.mxu0 }
 0x107   :  { %v178_v22 = vadd.f32 %v394_v19, %v177_v18 }
 0x108   :  { %v449_v20 = vpop.f32.mrf.mxu0 }
 0x10a   :  { %v180_v21 = vpop.f32.mrf.mxu0 }
 0x10b   :  { %v181_v23 = vadd.f32 %v394_v19, %v180_v21 }
 0x10c   :  { %v450_v24 = vpop.f32.mrf.mxu0 }
 0x10d   :  { %v184_v25 = vpack.c.bf16 %v181_v23, %v178_v22 }
 0x10f   :  { %495 = vtanh.bf16 %v184_v25 }
 0x11d   :  { %v496_v26 = vpop.eup %495 }
 0x11e   :  { %468 = vmatmul.mubr.bf16.vlgmr.msra.gmra.mxu1 %v496_v26 }
 0x1de   :  { %v291_v28 = vpop.f32.mrf.mxu1 }
 0x1df   :  { %v292_v29 = vadd.f32 %v404_v27, %v291_v28 }
 0x1e0   :  { %v469_v30 = vpop.f32.mrf.mxu1 }
 0x1e1   :  { %v299_v31 = vsel %vm298_vm1, %v292_v29, -inf }
 0x1e2   :  { %v300_v32 = vrot.slane %v299_v31, 4  ;;  %v294_v33 = vpop.f32.mrf.mxu1 }
 0x1e3   :  { %v295_v34 = vadd.f32 %v404_v27, %v294_v33 }
 0x1e4   :  { %v301_v35 = vmax.f32 %v299_v31, %v300_v32  ;;  %v470_v36 = vpop.f32.mrf.mxu1 }
 0x1e5   :  { %v306_v37 = vsel %vm298_vm1, %v295_v34, -inf }
 0x1e6   :  { %v302_v38 = vrot.slane %v301_v35, 2  ;;  %v307_v39 = vrot.slane %v306_v37, 4 }
 0x1e8   :  { %v303_v40 = vmax.f32 %v301_v35, %v302_v38  ;;  %v308_v41 = vmax.f32 %v306_v37, %v307_v39 }
 0x1ea   :  { %v304_v42 = vrot.slane %v303_v40, 1  ;;  %v309_v43 = vrot.slane %v308_v41, 2 }
 0x1ec   :  { %v305_v44 = vmax.f32 %v303_v40, %v304_v42  ;;  %v310_v45 = vmax.f32 %v308_v41, %v309_v43 }
 0x1ee   :  { %v313_v46 = vsub.f32 %v292_v29, %v305_v44  ;;  %v311_v47 = vrot.slane %v310_v45, 1 }
 0x1f0   :  { %v315_v48 = vmul.f32 1.442695, %v313_v46  ;;  %v312_v49 = vmax.f32 %v310_v45, %v311_v47 }
 0x1f2   :  { %497 = vpow2.f32 %v315_v48  ;;  %v314_v50 = vsub.f32 %v295_v34, %v312_v49 }
 0x1f4   :  { %v317_v51 = vmul.f32 1.442695, %v314_v50 }
 0x1f6   :  { %499 = vpow2.f32 %v317_v51 }
 0x1ff   :  { %v498_v52 = vpop.eup %497 }
 0x200   :  { %v319_v53 = vsel %vm298_vm1, %v498_v52, 0.0 }
 0x201   :  { %v320_v54 = vrot.slane %v319_v53, 4 }
 0x203   :  { %v500_v55 = vpop.eup %499  ;;  %v321_v56 = vadd.f32 %v320_v54, %v319_v53 }
 0x204   :  { %v326_v57 = vsel %vm298_vm1, %v500_v55, 0.0 }
 0x205   :  { %v322_v58 = vrot.slane %v321_v56, 2  ;;  %v327_v59 = vrot.slane %v326_v57, 4 }
 0x207   :  { %v323_v60 = vadd.f32 %v322_v58, %v321_v56  ;;  %v328_v61 = vadd.f32 %v327_v59, %v326_v57 }
 0x209   :  { %v329_v62 = vrot.slane %v328_v61, 2  ;;  %v324_v63 = vrot.slane %v323_v60, 1 }
 0x20b   :  { %v330_v0 = vadd.f32 %v329_v62, %v328_v61  ;;  %v325_v1 = vadd.f32 %v324_v63, %v323_v60 }
 0x20d   :  { %501 = vrcp.f32 %v325_v1  ;;  %v331_v2 = vrot.slane %v330_v0, 1 }
 0x20f   :  { %v332_v3 = vadd.f32 %v331_v2, %v330_v0 }
 0x211   :  { %503 = vrcp.f32 %v332_v3 }
 0x21a   :  { %v502_v4 = vpop.eup %501 }
 0x21b   :  { %v335_v5 = vmul.f32 %v502_v4, %v498_v52 }
 0x21d   :  { %v339_v6 = vsel %vm298_vm1, %v335_v5, -inf  ;;  %337 = vst.msk [vmem:[%s653_s5] sm:$0xff] %vm298_vm1, %v335_v5 }
 0x21e   :  { %v504_v7 = vpop.eup %503  ;;  %340 = vmax.xlane.f32.xlu0 %v339_v6 }
 0x21f   :  { %v336_v8 = vmul.f32 %v504_v7, %v500_v55 }
 0x221   :  { %v342_v9 = vsel %vm298_vm1, %v336_v8, -inf  ;;  %338 = vst.msk [vmem:[%s653_s5 + $0x8] sm:$0xff] %vm298_vm1, %v336_v8 }
 0x222   :  { %343 = vmax.xlane.f32.xlu0 %v342_v9 }
 0x2a7   :  { %v341_v12 = vpop.xlane.xlu0 %340 }
 0x2a8   :  { %vm347_vm2 = vcmp.eq.f32.partialorder %v335_v5, %v341_v12 }
 0x2a9   :  { %v349_v13 = vsel %vm347_vm2, %v346_v11, 4 }
 0x2aa   :  { %v351_v14 = vsel %vm298_vm1, %v349_v13, 2147483647 }
 0x2ab   :  { %v344_v15 = vpop.xlane.xlu0 %343  ;;  %v353_v16 = vshra.s32 %v351_v14, 16  ;;  %v352_v22 = vand.u32 65535, %v351_v14 }
 0x2ac   :  { %vm348_vm3 = vcmp.eq.f32.partialorder %v336_v8, %v344_v15 }
 0x2ad   :  { %v350_v17 = vsel %vm348_vm3, %v346_v11, 4  ;;  %v355_v18 = vcvt.s32.f32 %v353_v16  ;;  %v354_v24 = vcvt.s32.f32 %v352_v22 }
 0x2ae   :  { %v366_v19 = vsel %vm298_vm1, %v350_v17, 2147483647 }
 0x2af   :  { %356 = vmin.xlane.f32.xlu1 %v355_v18  ;;  %v368_v20 = vshra.s32 %v366_v19, 16  ;;  %v367_v25 = vand.u32 65535, %v366_v19 }
 0x2b1   :  { %v370_v21 = vcvt.s32.f32 %v368_v20  ;;  %v369_v28 = vcvt.s32.f32 %v367_v25 }
 0x2b3   :  { %371 = vmin.xlane.f32.xlu1 %v370_v21 }
 0x338   :  { %v357_v23 = vpop.xlane.xlu1 %356 }
 0x339   :  { %vm358_vm4 = vcmp.eq.f32.partialorder %v355_v18, %v357_v23  ;;  %v363_v30 = vcvt.f32.s32 %v357_v23 }
 0x33a   :  { %v359_v26 = vsel %vm358_vm4, %v354_v24, inf }
 0x33b   :  { %360 = vmin.xlane.f32.xlu0 %v359_v26  ;;  %v364_v32 = vshll.u32 %v363_v30, 16 }
 0x33c   :  { %v372_v27 = vpop.xlane.xlu1 %371 }
 0x33d   :  { %vm373_vm5 = vcmp.eq.f32.partialorder %v370_v21, %v372_v27  ;;  %v378_v33 = vcvt.f32.s32 %v372_v27 }
 0x33e   :  { %v374_v29 = vsel %vm373_vm5, %v369_v28, inf }
 0x33f   :  { %375 = vmin.xlane.f32.xlu1 %v374_v29  ;;  %v379_v37 = vshll.u32 %v378_v33, 16 }
 0x3c4   :  { %v361_v31 = vpop.xlane.xlu0 %360 }
 0x3c5   :  { %v362_v34 = vcvt.f32.s32 %v361_v31 }
 0x3c7   :  { %v365_v35 = vadd.s32 %v364_v32, %v362_v34 }
 0x3c8   :  { %v376_v36 = vpop.xlane.xlu1 %375 }
 0x3c9   :  { %382 = vst.msk [vmem:[%s654_s6] sm:$0xff] %vm381_vm6, %v365_v35  ;;  %v377_v38 = vcvt.f32.s32 %v376_v36 }
 0x3cb   :  { %v380_v39 = vadd.s32 %v379_v37, %v377_v38 }
 0x3cd   :  { %383 = vst.msk [vmem:[%s654_s6 + $0x8] sm:$0xff] %vm381_vm6, %v380_v39 }
 0x3ce   :  { %392 = vsyncpa [#allocation3], 1 }
 0x3cf   :  { %393 = vsyncpa [#allocation5], 1 }

</bundles_post_ra>
